<compile_context>
chip_gen: v7x
topology: tpu7x:2x2x1
jax: 0.10.0
libtpu: 0.0.40
codegen_flags: <defaults>
</compile_context>

<pallas_src>
import numpy as np
import jax
import jax.numpy as jnp
from jax import lax
from jax.experimental import pallas as pl
from jax.experimental.pallas import tpu as pltpu

TEMPERATURE = 0.2
INV_TEMPERATURE = 1.0 / TEMPERATURE
_TINY = 1e-30
_NEG = -1e30


def _kernel(m_ref, lab_ref, x_ref, t_ref, out_ref):
    # m (B,1) i32 | lab (B,1,1) i32 | x,t (B,N,L) | out (1,128) f32
    x = x_ref[...].astype(jnp.float32)
    t = t_ref[...].astype(jnp.float32)
    lab = lab_ref[...]                                     # (B,1,1) int32
    m = m_ref[...]                                         # (B,1)   int32
    B, N, L = x.shape

    # per-batch column x[b, :, lab[b]] via one-hot masked lane-reduce (in-kernel gather)
    lidx = lax.broadcasted_iota(jnp.int32, (1, 1, L), 2)
    sel = lidx == lab                                      # (B,1,L)
    p = jnp.sum(jnp.where(sel, x, 0.0), axis=-1)           # (B,N)
    q = jnp.sum(jnp.where(sel, t, 0.0), axis=-1)           # (B,N)

    # first-m-positions validity mask (the module slices [:m])
    col = lax.broadcasted_iota(jnp.int32, (1, N), 1)
    valid = col < m                                        # (B,N)

    p5 = p * INV_TEMPERATURE
    q5 = q * INV_TEMPERATURE
    neg = jnp.float32(_NEG)

    # masked log_softmax(p / T) along the sequence dim
    pmax = jnp.max(jnp.where(valid, p5, neg), axis=-1, keepdims=True)
    pexp = jnp.where(valid, jnp.exp(p5 - pmax), 0.0)
    log_psum = jnp.log(jnp.maximum(jnp.sum(pexp, axis=-1, keepdims=True), _TINY))
    logp = p5 - pmax - log_psum

    # masked softmax(q / T); log(target) formed analytically (per-row log only)
    qmax = jnp.max(jnp.where(valid, q5, neg), axis=-1, keepdims=True)
    qexp = jnp.where(valid, jnp.exp(q5 - qmax), 0.0)
    qsum = jnp.maximum(jnp.sum(qexp, axis=-1, keepdims=True), _TINY)
    log_qsum = jnp.log(qsum)
    target = qexp * (1.0 / qsum)                           # per-row reciprocal only

    # kl_div(logp, target, 'sum') = sum target * (log(target) - logp), summed over batch
    kl = jnp.where(valid, target * ((q5 - qmax - log_qsum) - logp), 0.0)
    loss = jnp.sum(kl)

    out_ref[...] = jnp.broadcast_to(loss, out_ref.shape).astype(jnp.float32)


def clip_kl_only_pos_forward(x, target, mask, query_labels):
    """Pallas TPU forward of clip_kl_only_pos. Returns a scalar float32 loss."""
    B, N, L = x.shape
    labels = jnp.asarray(query_labels, dtype=jnp.int32).reshape(B)
    # tiny scalar glue: per-batch valid length m = count(mask[label] > 0)
    counts = jnp.sum((mask > 0).astype(jnp.int32), axis=-1)       # (num_labels,)
    m_b = counts[labels].astype(jnp.int32)                        # (B,)

    out = pl.pallas_call(
        _kernel,
        out_shape=jax.ShapeDtypeStruct((1, 128), jnp.float32),
        grid=(1,),
        in_specs=[
            pl.BlockSpec((B, 1), lambda i: (0, 0)),
            pl.BlockSpec((B, 1, 1), lambda i: (0, 0, 0)),
            pl.BlockSpec((B, N, L), lambda i: (0, 0, 0)),
            pl.BlockSpec((B, N, L), lambda i: (0, 0, 0)),
        ],
        out_specs=pl.BlockSpec((1, 128), lambda i: (0, 0)),
        compiler_params=pltpu.CompilerParams(
            dimension_semantics=("arbitrary",)),
    )(m_b.reshape(B, 1), labels.reshape(B, 1, 1), x, target)
    return out[0, 0]


def _reference_loss(x, target, mask, query_labels):
    """Pure numpy (float64) reference mirroring the PyTorch module."""
    x = np.asarray(x, dtype=np.float64)
    t = np.asarray(target, dtype=np.float64)
    mask = np.asarray(mask)
    labels = np.asarray(query_labels)
    total = 0.0
    for idx in range(labels.shape[0]):
        label = int(labels[idx])
        m = int(np.count_nonzero(mask[label] > 0))
        p = x[idx, :m, label] / TEMPERATURE
        q = t[idx, :m, label] / TEMPERATURE
        pmax = p.max()
        logp = p - (np.log(np.sum(np.exp(p - pmax))) + pmax)
        qe = np.exp(q - q.max())
        py = qe / qe.sum()
        total += float(np.sum(py * (np.log(py) - logp)))
    return total


if __name__ == "__main__":
    B, N, L = 2, 8, 32
    key = jax.random.PRNGKey(0)
    k1, k2 = jax.random.split(key)
    x = jax.random.normal(k1, (B, N, L), dtype=jnp.float32)
    target = jax.random.normal(k2, (B, N, L), dtype=jnp.float32)

    mask_np = np.zeros((L, N), dtype=np.float32)
    mask_np[5, :6] = 1.0     # label 5  -> m = 6
    mask_np[17, :] = 1.0     # label 17 -> m = 8
    mask_np[3, :3] = 1.0     # an unrelated label row
    mask = jnp.asarray(mask_np)
    query_labels = jnp.array([5, 17], dtype=jnp.int32)

    loss = clip_kl_only_pos_forward(x, target, mask, query_labels)
    loss = jax.block_until_ready(loss)

    ref = _reference_loss(x, target, mask_np, np.asarray(query_labels))
    np.testing.assert_allclose(float(loss), float(ref), rtol=1e-4, atol=1e-5)
    print("KERNEL_OK")
</pallas_src>

<mosaic_0001>
module attributes {stable_mosaic.version = 11 : i64} {
  func.func @_kernel(%arg0: i32, %arg1: memref<2x1xi32, #tpu.memory_space<vmem>>, %arg2: memref<2x1x1xi32, #tpu.memory_space<vmem>>, %arg3: memref<2x8x32xf32, #tpu.memory_space<vmem>>, %arg4: memref<2x8x32xf32, #tpu.memory_space<vmem>>, %arg5: memref<1x128xf32, #tpu.memory_space<vmem>>) attributes {dimension_semantics = [#tpu.dimension_semantics<arbitrary>], iteration_bounds = array<i64: 1>, scalar_prefetch = 0 : i64, scratch_operands = 0 : i64, tpu.core_type = #tpu.core_type<tc>, window_params = [{pipeline_mode = #tpu.pipeline_mode<synchronous>, transform_indices = @transform_0, window_bounds = array<i64: 2, 1>}, {pipeline_mode = #tpu.pipeline_mode<synchronous>, transform_indices = @transform_1, window_bounds = array<i64: 2, 1, 1>}, {pipeline_mode = #tpu.pipeline_mode<synchronous>, transform_indices = @transform_2, window_bounds = array<i64: 2, 8, 32>}, {pipeline_mode = #tpu.pipeline_mode<synchronous>, transform_indices = @transform_3, window_bounds = array<i64: 2, 8, 32>}, {pipeline_mode = #tpu.pipeline_mode<synchronous>, transform_indices = @transform_4, window_bounds = array<i64: 1, 128>}]} {
    %c0 = arith.constant 0 : index
    %c0_0 = arith.constant 0 : index
    %c0_1 = arith.constant 0 : index
    %0 = vector.load %arg3[%c0, %c0_0, %c0_1] : memref<2x8x32xf32, #tpu.memory_space<vmem>>, vector<2x8x32xf32>
    %c0_2 = arith.constant 0 : index
    %c0_3 = arith.constant 0 : index
    %c0_4 = arith.constant 0 : index
    %1 = vector.load %arg4[%c0_2, %c0_3, %c0_4] : memref<2x8x32xf32, #tpu.memory_space<vmem>>, vector<2x8x32xf32>
    %c0_5 = arith.constant 0 : index
    %c0_6 = arith.constant 0 : index
    %c0_7 = arith.constant 0 : index
    %2 = vector.load %arg2[%c0_5, %c0_6, %c0_7] : memref<2x1x1xi32, #tpu.memory_space<vmem>>, vector<2x1x1xi32>
    %c0_8 = arith.constant 0 : index
    %c0_9 = arith.constant 0 : index
    %3 = vector.load %arg1[%c0_8, %c0_9] : memref<2x1xi32, #tpu.memory_space<vmem>>, vector<2x1xi32>
    %4 = tpu.iota {dimensions = array<i32: 2>} : vector<1x1x32xi32>
    %5 = vector.broadcast %4 : vector<1x1x32xi32> to vector<2x1x32xi32>
    %6 = vector.broadcast %2 : vector<2x1x1xi32> to vector<2x1x32xi32>
    %7 = arith.cmpi eq, %5, %6 : vector<2x1x32xi32>
    %cst = arith.constant 0.000000e+00 : f32
    %8 = vector.shape_cast %7 : vector<2x1x32xi1> to vector<2x1x32xi1>
    %9 = vector.broadcast %8 : vector<2x1x32xi1> to vector<2x8x32xi1>
    %10 = vector.broadcast %cst : f32 to vector<2x8x32xf32>
    %11 = arith.select %9, %0, %10 : vector<2x8x32xi1>, vector<2x8x32xf32>
    %cst_10 = arith.constant dense<0.000000e+00> : vector<2x8xf32>
    %12 = vector.multi_reduction <add>, %11, %cst_10 [2] : vector<2x8x32xf32> to vector<2x8xf32>
    %cst_11 = arith.constant 0.000000e+00 : f32
    %13 = vector.shape_cast %7 : vector<2x1x32xi1> to vector<2x1x32xi1>
    %14 = vector.broadcast %13 : vector<2x1x32xi1> to vector<2x8x32xi1>
    %15 = vector.broadcast %cst_11 : f32 to vector<2x8x32xf32>
    %16 = arith.select %14, %1, %15 : vector<2x8x32xi1>, vector<2x8x32xf32>
    %cst_12 = arith.constant dense<0.000000e+00> : vector<2x8xf32>
    %17 = vector.multi_reduction <add>, %16, %cst_12 [2] : vector<2x8x32xf32> to vector<2x8xf32>
    %18 = tpu.iota {dimensions = array<i32: 1>} : vector<1x8xi32>
    %19 = vector.broadcast %18 : vector<1x8xi32> to vector<2x8xi32>
    %20 = vector.broadcast %3 : vector<2x1xi32> to vector<2x8xi32>
    %21 = arith.cmpi slt, %19, %20 : vector<2x8xi32>
    %cst_13 = arith.constant 5.000000e+00 : f32
    %22 = vector.broadcast %cst_13 : f32 to vector<2x8xf32>
    %23 = arith.mulf %12, %22 : vector<2x8xf32>
    %cst_14 = arith.constant 5.000000e+00 : f32
    %24 = vector.broadcast %cst_14 : f32 to vector<2x8xf32>
    %25 = arith.mulf %17, %24 : vector<2x8xf32>
    %cst_15 = arith.constant -1.000000e+30 : f32
    %26 = vector.broadcast %cst_15 : f32 to vector<2x8xf32>
    %27 = arith.select %21, %23, %26 : vector<2x8xi1>, vector<2x8xf32>
    %cst_16 = arith.constant dense<0xFF800000> : vector<2xf32>
    %28 = vector.multi_reduction <maximumf>, %27, %cst_16 [1] : vector<2x8xf32> to vector<2xf32>
    %29 = vector.shape_cast %28 : vector<2xf32> to vector<2x1xf32>
    %30 = vector.broadcast %29 : vector<2x1xf32> to vector<2x8xf32>
    %31 = arith.subf %23, %30 : vector<2x8xf32>
    %32 = math.exp %31 : vector<2x8xf32>
    %cst_17 = arith.constant 0.000000e+00 : f32
    %33 = vector.broadcast %cst_17 : f32 to vector<2x8xf32>
    %34 = arith.select %21, %32, %33 : vector<2x8xi1>, vector<2x8xf32>
    %cst_18 = arith.constant dense<0.000000e+00> : vector<2xf32>
    %35 = vector.multi_reduction <add>, %34, %cst_18 [1] : vector<2x8xf32> to vector<2xf32>
    %36 = vector.shape_cast %35 : vector<2xf32> to vector<2x1xf32>
    %cst_19 = arith.constant 1.000000e-30 : f32
    %37 = vector.broadcast %cst_19 : f32 to vector<2x1xf32>
    %38 = arith.maximumf %36, %37 : vector<2x1xf32>
    %39 = math.log %38 : vector<2x1xf32>
    %40 = vector.broadcast %29 : vector<2x1xf32> to vector<2x8xf32>
    %41 = arith.subf %23, %40 : vector<2x8xf32>
    %42 = vector.broadcast %39 : vector<2x1xf32> to vector<2x8xf32>
    %43 = arith.subf %41, %42 : vector<2x8xf32>
    %cst_20 = arith.constant -1.000000e+30 : f32
    %44 = vector.broadcast %cst_20 : f32 to vector<2x8xf32>
    %45 = arith.select %21, %25, %44 : vector<2x8xi1>, vector<2x8xf32>
    %cst_21 = arith.constant dense<0xFF800000> : vector<2xf32>
    %46 = vector.multi_reduction <maximumf>, %45, %cst_21 [1] : vector<2x8xf32> to vector<2xf32>
    %47 = vector.shape_cast %46 : vector<2xf32> to vector<2x1xf32>
    %48 = vector.broadcast %47 : vector<2x1xf32> to vector<2x8xf32>
    %49 = arith.subf %25, %48 : vector<2x8xf32>
    %50 = math.exp %49 : vector<2x8xf32>
    %cst_22 = arith.constant 0.000000e+00 : f32
    %51 = vector.broadcast %cst_22 : f32 to vector<2x8xf32>
    %52 = arith.select %21, %50, %51 : vector<2x8xi1>, vector<2x8xf32>
    %cst_23 = arith.constant dense<0.000000e+00> : vector<2xf32>
    %53 = vector.multi_reduction <add>, %52, %cst_23 [1] : vector<2x8xf32> to vector<2xf32>
    %54 = vector.shape_cast %53 : vector<2xf32> to vector<2x1xf32>
    %cst_24 = arith.constant 1.000000e-30 : f32
    %55 = vector.broadcast %cst_24 : f32 to vector<2x1xf32>
    %56 = arith.maximumf %54, %55 : vector<2x1xf32>
    %57 = math.log %56 : vector<2x1xf32>
    %cst_25 = arith.constant 1.000000e+00 : f32
    %58 = vector.broadcast %cst_25 : f32 to vector<2x1xf32>
    %59 = arith.divf %58, %56 : vector<2x1xf32>
    %60 = vector.broadcast %59 : vector<2x1xf32> to vector<2x8xf32>
    %61 = arith.mulf %52, %60 : vector<2x8xf32>
    %62 = vector.broadcast %47 : vector<2x1xf32> to vector<2x8xf32>
    %63 = arith.subf %25, %62 : vector<2x8xf32>
    %64 = vector.broadcast %57 : vector<2x1xf32> to vector<2x8xf32>
    %65 = arith.subf %63, %64 : vector<2x8xf32>
    %66 = arith.subf %65, %43 : vector<2x8xf32>
    %67 = arith.mulf %61, %66 : vector<2x8xf32>
    %cst_26 = arith.constant 0.000000e+00 : f32
    %68 = vector.broadcast %cst_26 : f32 to vector<2x8xf32>
    %69 = arith.select %21, %67, %68 : vector<2x8xi1>, vector<2x8xf32>
    %70 = vector.shape_cast %69 : vector<2x8xf32> to vector<1x2x8xf32>
    %cst_27 = arith.constant dense<0.000000e+00> : vector<1xf32>
    %71 = vector.multi_reduction <add>, %70, %cst_27 [1, 2] : vector<1x2x8xf32> to vector<1xf32>
    %72 = vector.shape_cast %71 : vector<1xf32> to vector<1x1x1xf32>
    %73 = vector.extract %72[0, 0, 0] : f32 from vector<1x1x1xf32>
    %74 = vector.broadcast %73 : f32 to vector<1x128xf32>
    %c0_28 = arith.constant 0 : index
    %c0_29 = arith.constant 0 : index
    %75 = vector.load %arg5[%c0_28, %c0_29] : memref<1x128xf32, #tpu.memory_space<vmem>>, vector<1x128xf32>
    tpu.vector_store %arg5[%c0_28, %c0_29], %74 {strides = array<i32>} : memref<1x128xf32, #tpu.memory_space<vmem>>, vector<1x128xf32>,
    return
  }
  func.func @transform_0(%arg0: i32) -> (i32, i32) {
    %c0_i32 = arith.constant 0 : i32
    %c0_i32_0 = arith.constant 0 : i32
    %c0_i32_1 = arith.constant 0 : i32
    return %c0_i32, %c0_i32_0 : i32, i32
  }
  func.func @transform_1(%arg0: i32) -> (i32, i32, i32) {
    %c0_i32 = arith.constant 0 : i32
    %c0_i32_0 = arith.constant 0 : i32
    %c0_i32_1 = arith.constant 0 : i32
    %c0_i32_2 = arith.constant 0 : i32
    return %c0_i32, %c0_i32_0, %c0_i32_1 : i32, i32, i32
  }
  func.func @transform_2(%arg0: i32) -> (i32, i32, i32) {
    %c0_i32 = arith.constant 0 : i32
    %c0_i32_0 = arith.constant 0 : i32
    %c0_i32_1 = arith.constant 0 : i32
    %c0_i32_2 = arith.constant 0 : i32
    return %c0_i32, %c0_i32_0, %c0_i32_1 : i32, i32, i32
  }
  func.func @transform_3(%arg0: i32) -> (i32, i32, i32) {
    %c0_i32 = arith.constant 0 : i32
    %c0_i32_0 = arith.constant 0 : i32
    %c0_i32_1 = arith.constant 0 : i32
    %c0_i32_2 = arith.constant 0 : i32
    return %c0_i32, %c0_i32_0, %c0_i32_1 : i32, i32, i32
  }
  func.func @transform_4(%arg0: i32) -> (i32, i32) {
    %c0_i32 = arith.constant 0 : i32
    %c0_i32_0 = arith.constant 0 : i32
    %c0_i32_1 = arith.constant 0 : i32
    return %c0_i32, %c0_i32_0 : i32, i32
  }
}

</mosaic_0001>

<bundles_post_ra>
// kernel: tpu_custom_call.1
= control target key start
LH: loop header
LB: loop body
LE: loop exit
PB: predicated region body
PF: predicated region fallthrough
CT: control target
= control target key end

     0   :  { %9 = vsyncpa [#allocation3], 0  ;;  %s470_s0 = inlined_call_operand.vmem [shape: s32[2,1], index: 0, kind: input, shape index: {}]   ;;  %s471_s1 = inlined_call_operand.vmem [shape: s32[2,1,1], index: 1, kind: input, shape index: {}]   ;;  %s472_s2 = inlined_call_operand.hbm [shape: f32[2,8,32], index: 2, kind: input, shape index: {}]   ;;  %s473_s3 = inlined_call_operand.vmem [shape: f32[2,8,32], index: 3, kind: input, shape index: {}]   ;;  %s474_s4 = inlined_call_operand.hbm [shape: f32[1,128], index: 4, kind: output, shape index: {}]  }
   0x1   :  { %10 = vsyncpa [#allocation4], 0  ;;  %s353_s15 = smov [#allocation2]   ;;  %s305_s19 = scalar_lea.hbm %s472_s2, 256 }
   0x2   :  { %s20_s16 = sshll.u32 %s353_s15, 4  ;;  %p306_p0 = scmp.ne.s32.totalorder %s472_s2, %s305_s19  ;;  %s21_s16 = int_to_ptr.vmem [resolvable:$true] %s20_s16 }
   0x3   :  { %p309_p1 = scmp.lt.u32.totalorder %s305_s19, %s472_s2 }
   0x5   :  { %p311_p2 = pnand %p309_p1, %p306_p0 }
   0x7   :  { %314 = shalt.err (!%p311_p2)
}
   0x8   :  { %s315_s24 = scalar_lea.vmem %s21_s16, 256  ;;  %p320_p4 = scmp.lt.s32.totalorder %s21_s16, %s21_s16 }
   0x9   :  { %p316_p3 = scmp.ne.s32.totalorder %s21_s16, %s315_s24  ;;  %p321_p5 = scmp.lt.s32.totalorder %s315_s24, %s315_s24 }
   0xb   :  { %p322_p6 = por %p321_p5, %p320_p4 }
   0xd   :  { %p323_p7 = pnand %p322_p6, %p316_p3 }
   0xf   :  { %326 = shalt.err (!%p323_p7)
}
  0x10   :  { %s354_s25 = smov 128   ;;  %s355_s26 = smov 8  }
  0x11   :  { %26 = dma.hbm_to_vmem [thread:$0]  %s472_s2, 256, %s21_s16, [#allocation3], %s354_s25, %s354_s25, %s355_s26  }
  0x12   :  { %349 = dma.done.wait [#allocation3], 256  }
  0x13   :  { %350 = vsyncadd [#allocation3], 4294967040  ;;  %v356_v0 = vmov 0   ;;  %v36_v1 = vld [vmem:[%s471_s1] sm:$0x1]  ;;  %v39_v3 = vlaneseq  ;;  %v32_v10 = vld [vmem:[#allocation2] sm:$0xff] }
  0x14   :  { %289 = vset.pattern.permute.xlu0 %v356_v0  ;;  %290 = vset.pattern.permute.xlu1 %v356_v0  ;;  %v37_v2 = vld [vmem:[%s471_s1 + $0x1] sm:$0x1]  ;;  %vm63_vm0 = vcmask 261120   ;;  %v35_v18 = vld [vmem:[%s473_s3 + $0x8] sm:$0xff]  ;;  %vm96_vm3 = vcmask 1041409   ;;  %vm100_vm4 = vcmask 58368  }
  0x15   :  { %42 = vperm.xlu0 %289, %v36_v1   ;;  %v45_v4 = vshrl.u32 %v39_v3, 7  ;;  %v40_v6 = vand.u32 127, %v39_v3  ;;  %v34_v9 = vld [vmem:[%s473_s3] sm:$0xff] }
  0x16   :  { %v33_v17 = vld [vmem:[#allocation2 + $0x8] sm:$0xff] }
  0x17   :  { %v401_v5 = vsub.s32 0, %v45_v4  ;;  %v38_v23 = vld [vmem:[%s470_s0] sm:$0x3]  ;;  %v418_v28 = vsub.s32 %v40_v6, %v45_v4  ;;  %v111_v45 = vsub.s32 1, %v45_v4  ;;  %s357_s0 = smov [#allocation5]  }
  0x18   :  { %s273_s3 = sshll.u32 %s357_s0, 4  ;;  %s274_s3 = int_to_ptr.vmem [resolvable:$true] %s273_s3 }
  0x19   :  { %49 = vperm.xlu0 %289, %v37_v2   ;;  %s327_s12 = scalar_lea.vmem %s274_s3, 16  ;;  %s331_s13 = scalar_lea.vmem %s274_s3, 32 }
  0x1a   :  { %p328_p8 = scmp.ne.s32.totalorder %s274_s3, %s327_s12  ;;  %p332_p9 = scmp.lt.s32.totalorder %s274_s3, %s274_s3 }
  0x1b   :  { %p333_p10 = scmp.lt.s32.totalorder %s331_s13, %s327_s12 }
  0x1d   :  { %p334_p11 = por %p333_p10, %p332_p9 }
  0x1f   :  { %p335_p12 = pnand %p334_p11, %p328_p8 }
  0x94   :  { %v43_v7 = vpop.permute.xlu0 %42 }
  0x95   :  { %v47_v8 = vrot.slane %v43_v7, %v401_v5 }
  0x97   :  { %vm55_vm1 = vcmp.eq.s32.totalorder %v40_v6, %v47_v8 }
  0x98   :  { %v50_v11 = vpop.permute.xlu0 %49  ;;  %v70_v12 = vsel %vm55_vm1, %v34_v9, 0.0  ;;  %v61_v13 = vsel %vm55_vm1, %v32_v10, 0.0 }
  0x99   :  { %v54_v14 = vrot.slane %v50_v11, %v401_v5  ;;  %v72_v15 = vsel %vm63_vm0, %v70_v12, 0.0  ;;  %v64_v16 = vsel %vm63_vm0, %v61_v13, 0.0 }
  0x9a   :  { %73 = vadd.xlane.f32.xlu0 %v72_v15  ;;  %65 = vadd.xlane.f32.xlu1 %v64_v16 }
  0x9b   :  { %vm56_vm2 = vcmp.eq.s32.totalorder %v40_v6, %v54_v14 }
  0x9c   :  { %v62_v19 = vsel %vm56_vm2, %v33_v17, 0.0  ;;  %v71_v21 = vsel %vm56_vm2, %v35_v18, 0.0 }
  0x9d   :  { %v67_v20 = vsel %vm63_vm0, %v62_v19, 0.0  ;;  %v75_v22 = vsel %vm63_vm0, %v71_v21, 0.0 }
  0x9e   :  { %68 = vadd.xlane.f32.xlu1 %v67_v20 }
  0xa2   :  { %76 = vadd.xlane.f32.xlu1 %v75_v22 }
  0xb3   :  { %79 = vperm.xlu1 %290, %v38_v23  }
 0x127   :  { %v66_v24 = vpop.xlane.xlu1 %65  ;;  %v74_v25 = vpop.xlane.xlu0 %73 }
 0x128   :  { %v84_v29 = vmul.f32 5.0, %v74_v25  ;;  %v82_v30 = vmul.f32 5.0, %v66_v24 }
 0x12a   :  { %v164_v34 = vrot.slane %v84_v29, %v418_v28  ;;  %v91_v35 = vrot.slane %v82_v30, %v418_v28 }
 0x12b   :  { %v69_v26 = vpop.xlane.xlu1 %68 }
 0x12c   :  { %v83_v27 = vmul.f32 5.0, %v69_v26 }
 0x12e   :  { %v95_v32 = vrot.slane %v83_v27, %v418_v28 }
 0x12f   :  { %v77_v31 = vpop.xlane.xlu1 %76 }
 0x130   :  { %v85_v33 = vmul.f32 5.0, %v77_v31  ;;  %v97_v40 = vsel %vm96_vm3, %v95_v32, %v91_v35 }
 0x132   :  { %v168_v36 = vrot.slane %v85_v33, %v418_v28 }
 0x133   :  { %v80_v37 = vpop.permute.xlu1 %79 }
 0x134   :  { %vm424_vm5 = vcmp.lt.s32.totalorder %v40_v6, %v80_v37  ;;  %v169_v39 = vsel %vm96_vm3, %v168_v36, %v164_v34 }
 0x135   :  { %v171_v41 = vsel %vm424_vm5, %v169_v39, -1e+30  ;;  %v99_v42 = vsel %vm424_vm5, %v97_v40, -1e+30 }
 0x136   :  { %v172_v43 = vsel %vm100_vm4, %v171_v41, -inf  ;;  %v101_v44 = vsel %vm100_vm4, %v99_v42, -inf }
 0x137   :  { %173 = vmax.xlane.f32.xlu0 %v172_v43  ;;  %102 = vmax.xlane.f32.xlu1 %v101_v44 }
 0x1c4   :  { %v174_v46 = vpop.xlane.xlu0 %173  ;;  %v103_v47 = vpop.xlane.xlu1 %102 }
 0x1c5   :  { %v179_v48 = vrot.slane %v174_v46, %v401_v5  ;;  %v108_v49 = vrot.slane %v103_v47, %v401_v5  ;;  %v112_v50 = vrot.slane %v103_v47, %v111_v45  ;;  %v183_v53 = vrot.slane %v174_v46, %v111_v45 }
 0x1c7   :  { %v186_v51 = vsub.f32 %v84_v29, %v179_v48  ;;  %v115_v52 = vsub.f32 %v82_v30, %v108_v49  ;;  %v116_v55 = vsub.f32 %v83_v27, %v112_v50  ;;  %v187_v57 = vsub.f32 %v85_v33, %v183_v53 }
 0x1c9   :  { %v188_v54 = vmul.f32 1.442695, %v186_v51  ;;  %v117_v56 = vmul.f32 1.442695, %v115_v52  ;;  %v119_v58 = vmul.f32 1.442695, %v116_v55 }
 0x1ca   :  { %v190_v59 = vmul.f32 1.442695, %v187_v57 }
 0x1cb   :  { %291 = vpow2.f32 %v188_v54 }
 0x1cc   :  { %293 = vpow2.f32 %v117_v56 }
 0x1cd   :  { %295 = vpow2.f32 %v119_v58 }
 0x1ce   :  { %297 = vpow2.f32 %v190_v59 }
 0x1d5   :  { %v292_v60 = vpop.eup %291 }
 0x1d6   :  { %195 = vperm.xlu1 %290, %v292_v60   ;;  %v294_v61 = vpop.eup %293 }
 0x1d7   :  { %124 = vperm.xlu0 %289, %v294_v61   ;;  %v296_v62 = vpop.eup %295 }
 0x1d8   :  { %v298_v63 = vpop.eup %297 }
 0x1db   :  { %127 = vperm.xlu0 %289, %v296_v62  }
 0x1df   :  { %198 = vperm.xlu0 %289, %v298_v63  }
 0x255   :  { %v196_v4 = vpop.permute.xlu1 %195 }
 0x256   :  { %v125_v0 = vpop.permute.xlu0 %124  ;;  %v203_v9 = vrot.slane %v196_v4, %v418_v28 }
 0x257   :  { %v132_v2 = vrot.slane %v125_v0, %v418_v28 }
 0x25a   :  { %v128_v1 = vpop.permute.xlu0 %127 }
 0x25b   :  { %v136_v3 = vrot.slane %v128_v1, %v418_v28 }
 0x25d   :  { %v137_v6 = vsel %vm96_vm3, %v136_v3, %v132_v2 }
 0x25e   :  { %v199_v7 = vpop.permute.xlu0 %198  ;;  %v139_v8 = vsel %vm424_vm5, %v137_v6, 0.0 }
 0x25f   :  { %v207_v10 = vrot.slane %v199_v7, %v418_v28  ;;  %v140_v11 = vsel %vm100_vm4, %v139_v8, 0.0 }
 0x260   :  { %141 = vadd.xlane.f32.xlu0 %v140_v11 }
 0x261   :  { %v208_v12 = vsel %vm96_vm3, %v207_v10, %v203_v9 }
 0x262   :  { %v210_v13 = vsel %vm424_vm5, %v208_v12, 0.0 }
 0x263   :  { %v211_v14 = vsel %vm100_vm4, %v210_v13, 0.0 }
 0x264   :  { %212 = vadd.xlane.f32.xlu1 %v211_v14 }
 0x2ed   :  { %v142_v15 = vpop.xlane.xlu0 %141 }
 0x2ee   :  { %v143_v16 = vmax.f32 %v142_v15, 1e-30 }
 0x2f0   :  { %299 = vlog2.f32 %v143_v16 }
 0x2f1   :  { %v213_v17 = vpop.xlane.xlu1 %212 }
 0x2f2   :  { %v214_v18 = vmax.f32 %v213_v17, 1e-30 }
 0x2f4   :  { %301 = vlog2.f32 %v214_v18 }
 0x2f5   :  { %303 = vrcp.f32 %v214_v18 }
 0x2fa   :  { %v300_v19 = vpop.eup %299 }
 0x2fb   :  { %v145_v20 = vmul.f32 0.6931472, %v300_v19 }
 0x2fd   :  { %v150_v22 = vrot.slane %v145_v20, %v401_v5  ;;  %v154_v23 = vrot.slane %v145_v20, %v111_v45 }
 0x2fe   :  { %v302_v21 = vpop.eup %301 }
 0x2ff   :  { %v216_v24 = vmul.f32 0.6931472, %v302_v21  ;;  %v158_v27 = vsub.f32 %v116_v55, %v154_v23  ;;  %v157_v30 = vsub.f32 %v115_v52, %v150_v22  ;;  %v304_v34 = vpop.eup %303 }
 0x300   :  { %v219_v40 = vmul.f32 %v304_v34, %v210_v13 }
 0x301   :  { %v224_v25 = vrot.slane %v216_v24, %v401_v5  ;;  %v228_v26 = vrot.slane %v216_v24, %v111_v45 }
 0x303   :  { %v232_v29 = vsub.f32 %v187_v57, %v228_v26  ;;  %v231_v31 = vsub.f32 %v186_v51, %v224_v25 }
 0x305   :  { %v234_v32 = vsub.f32 %v232_v29, %v158_v27  ;;  %v233_v33 = vsub.f32 %v231_v31, %v157_v30 }
 0x307   :  { %241 = vperm.xlu1 %290, %v234_v32   ;;  %238 = vperm.xlu0 %289, %v233_v33  }
 0x386   :  { %v242_v35 = vpop.permute.xlu1 %241  ;;  %v239_v36 = vpop.permute.xlu0 %238 }
 0x387   :  { %v250_v37 = vrot.slane %v242_v35, %v418_v28  ;;  %v246_v39 = vrot.slane %v239_v36, %v418_v28 }
 0x389   :  { %v251_v5 = vsel %vm96_vm3, %v250_v37, %v246_v39 }
 0x38a   :  { %v253_v41 = vmul.f32 %v251_v5, %v219_v40 }
 0x38c   :  { %v254_v42 = vsel %vm424_vm5, %v253_v41, 0.0 }
 0x38d   :  { %v255_v43 = vsel %vm100_vm4, %v254_v42, 0.0 }
 0x38e   :  { %256 = vadd.xlane.f32.xlu0 %v255_v43 }
 0x41b   :  { %v257_v44 = vpop.xlane.xlu0 %256 }
 0x41c   :  { %v258_v45 = vrot.slane %v257_v44, 4 }
 0x41e   :  { %v259_v46 = vadd.f32 %v258_v45, %v257_v44 }
 0x420   :  { %v260_v47 = vrot.slane %v259_v46, 2 }
 0x422   :  { %v261_v48 = vadd.f32 %v260_v47, %v259_v46 }
 0x424   :  { %v262_v49 = vrot.slane %v261_v48, 1 }
 0x426   :  { %v263_v50 = vadd.f32 %v262_v49, %v261_v48 }
 0x428   :  { %282 = vpush %v263_v50 }
 0x459   :  { %s283_s11 = spop %282 }
 0x45a   :  { %v265_v28 = vstv %s283_s11 }
 0x45b   :  { %266 = vst [vmem:[#allocation5] sm:$0x1] %v265_v28 }
 0x45c   :  { %338 = shalt.err (!%p335_p12)
}
 0x45d   :  { %s339_s16 = scalar_lea.hbm %s474_s4, 16 }
 0x45e   :  { %p340_p13 = scmp.ne.s32.totalorder %s474_s4, %s339_s16  ;;  %p343_p0 = scmp.lt.u32.totalorder %s339_s16, %s474_s4 }
 0x460   :  { %p345_p1 = pnand %p343_p0, %p340_p13 }
 0x462   :  { %348 = shalt.err (!%p345_p1)
}
 0x463   :  { %276 = dma.vmem_to_hbm [thread:$0]  %s274_s3, 16, %s474_s4, [#allocation4]  }
 0x464   :  { %351 = dma.done.wait [#allocation4], 16  }
 0x465   :  { %352 = vsyncadd [#allocation4], 4294967280 }
 0x466   :  { %280 = vsyncpa [#allocation3], 1 }
 0x467   :  { %281 = vsyncpa [#allocation4], 1 }

</bundles_post_ra>
